<compile_context>
chip_gen: v5e
topology: v5e:2x2
jax: 0.10.0
libtpu: 0.0.40
codegen_flags: <defaults>
</compile_context>

<pallas_src>
import functools

import jax
import jax.numpy as jnp
from jax.experimental import pallas as pl
from jax.experimental.pallas import tpu as pltpu

N_KERNELS = 5
MUL_FACTOR = 2.0


def _round_up(x, m):
    return ((x + m - 1) // m) * m


def _vmem_limit_bytes():
    cap = 64 * 1024 * 1024
    try:
        info = pltpu.get_tpu_info()
        cap = int(getattr(info, "vmem_capacity_bytes", cap))
    except Exception:
        pass
    # Never request all of physical VMEM (v7x has only 64 MiB / TensorCore);
    # leave headroom for Mosaic-internal scratch and pipeline buffers.
    return min(cap * 3 // 4, 96 * 1024 * 1024)


def _pick_dk(d):
    """Feature-dim block: full D when small, else a 128-multiple that divides
    round_up(D, 128) (preferring larger) to keep MXU K wide and padding low."""
    if d <= 512:
        return d
    d128 = _round_up(d, 128)
    for cand in (512, 384, 256, 128):
        if d128 % cand == 0:
            return cand
    return 512


def _pick_tiles(n, dk, out_itemsize, vmem_limit):
    """Rectangular (TM, TN) output tiles sized against the per-chip VMEM budget.
    TN lane-dense (<=512); TM grown as far as the budget allows (<=2048)."""
    n128 = _round_up(n, 128)
    divisors = [t for t in range(128, n128 + 1, 128) if n128 % t == 0]
    budget = int(vmem_limit * 0.8)

    def cost(tm, tn):
        return (2 * tm * dk * 4               # xi blocks (double buffered, f32)
                + 2 * tn * dk * 4             # xj blocks
                + 2 * tm * tn * out_itemsize  # output tiles
                + tm * tn * 4                 # gram accumulator scratch
                + 4 * (tm + tn) * 4)          # sq row/col blocks

    tn = 128
    for t in divisors:
        if t <= 512 and cost(128, t) <= budget:
            tn = t
    tm = 128
    for t in divisors:
        if t <= 2048 and cost(t, tn) <= budget:
            tm = t
    return tm, tn


def _rbf_tile_kernel(s_ref, xi_ref, xj_ref, sqi_ref, sqj_ref, o_ref, acc_ref,
                     *, use_bf16_gram):
    # s_ref  : (1,) SMEM scalar = -1 / (bandwidth * max_multiplier)   (s < 0)
    # xi_ref : (TM, DK) VMEM, xj_ref: (TN, DK) VMEM   (K-blocked feature dim)
    # sqi_ref: (TM, 1) row norms, sqj_ref: (1, TN) col norms
    # acc_ref: (TM, TN) f32 VMEM scratch holding sum_k (-2*s) * <xi, xj>.
    k = pl.program_id(2)

    @pl.when(k == 0)
    def _init():
        acc_ref[...] = jnp.zeros_like(acc_ref)

    s = s_ref[0]
    # Fold the (-2*s) scale into the LHS (TM*DK ops, amortized over TN columns)
    # so the per-element epilogue is add + add + min + exp only.
    xi = xi_ref[...] * (-2.0 * s)
    xj = xj_ref[...]
    if use_bf16_gram:
        xi = xi.astype(jnp.bfloat16)
        xj = xj.astype(jnp.bfloat16)
    # gram[i, j] = <xi_i, xj_j>: contract the last dim of both operands so the
    # MXU is fed without a materialized transposed copy of x.
    acc_ref[...] += jax.lax.dot_general(
        xi, xj, (((1,), (1,)), ((), ())), preferred_element_type=jnp.float32)

    @pl.when(k == pl.num_programs(2) - 1)
    def _finalize():
        # exponent = s * max(l2, 0) = min(s*sqi + s*sqj + (-2*s)*gram, 0)
        e = jnp.minimum(sqi_ref[...] * s + sqj_ref[...] * s + acc_ref[...], 0.0)
        base = jnp.exp(e)                    # single EUP exp per element
        # Multipliers form a geometric series with ratio 2 -> the five terms are
        # base ** (2**j): accumulate by repeated squaring (pure VALU).
        acc = base
        term = base
        for _ in range(N_KERNELS - 1):
            term = term * term
            acc = acc + term
        o_ref[...] = acc.astype(o_ref.dtype)


def rbf_pallas(x, bandwidth=None, out_dtype=jnp.float32, use_bf16_gram=False,
               tile_override=None):
    x = x.astype(jnp.float32)
    n, d = x.shape

    # Center the data (pairwise distances are translation-invariant): this makes
    # the hoisted bandwidth identity exact without cancellation and conditions
    # the sqi + sqj - 2*gram subtraction near the diagonal.
    xc = x - jnp.mean(x, axis=0, keepdims=True)
    sq = jnp.sum(xc * xc, axis=1)                    # (N,)  ||xi - mean||^2

    if bandwidth is None:
        # sum_ij ||xi - xj||^2 = 2 * N * sum_i ||xi - mean||^2   (O(N*D) hoist)
        sum_l2 = 2.0 * n * jnp.sum(sq)
        denom = float(n * n - n)                     # N==1 -> 0/0 -> NaN (torch parity)
        bw = sum_l2 / denom
    else:
        bw = jnp.float32(bandwidth)
    mult_max = MUL_FACTOR ** (N_KERNELS - 1 - N_KERNELS // 2)   # = 4.0
    s = (-1.0 / (bw * mult_max)).reshape(1).astype(jnp.float32)

    out_dtype = jnp.dtype(out_dtype)
    vmem_limit = _vmem_limit_bytes()
    dk = _pick_dk(d)
    if tile_override is not None:
        tm, tn = tile_override
    else:
        tm, tn = _pick_tiles(n, dk, out_dtype.itemsize, vmem_limit)

    n_pad = _round_up(n, 128)
    assert n_pad % tm == 0 and n_pad % tn == 0, "tiles must divide padded N"
    d_pad = _round_up(d, dk) if dk < d else d

    x_p = jnp.pad(xc, ((0, n_pad - n), (0, d_pad - d)))
    sq_p = jnp.pad(sq, (0, n_pad - n))
    sq_col = sq_p.reshape(n_pad, 1)
    sq_row = sq_p.reshape(1, n_pad)

    grid = (n_pad // tm, n_pad // tn, d_pad // dk)
    kernel = functools.partial(_rbf_tile_kernel, use_bf16_gram=use_bf16_gram)

    out = pl.pallas_call(
        kernel,
        out_shape=jax.ShapeDtypeStruct((n_pad, n_pad), out_dtype),
        grid=grid,
        in_specs=[
            pl.BlockSpec(memory_space=pltpu.MemorySpace.SMEM),     # scale scalar (1,)
            pl.BlockSpec((tm, dk), lambda i, j, k: (i, k)),        # X rows for tile i
            pl.BlockSpec((tn, dk), lambda i, j, k: (j, k)),        # X rows for tile j
            pl.BlockSpec((tm, 1), lambda i, j, k: (i, 0)),         # ||xi||^2 column
            pl.BlockSpec((1, tn), lambda i, j, k: (0, j)),         # ||xj||^2 row
        ],
        out_specs=pl.BlockSpec((tm, tn), lambda i, j, k: (i, j)),
        scratch_shapes=[pltpu.VMEM((tm, tn), jnp.float32)],
        compiler_params=pltpu.CompilerParams(
            dimension_semantics=("parallel", "parallel", "arbitrary"),
            vmem_limit_bytes=vmem_limit),
    )(s, x_p, x_p, sq_col, sq_row)
    return out[:n, :n]


def rbf_reference(x):
    # Pure-JAX mirror of the PyTorch forward (bandwidth=None path).
    multipliers = (MUL_FACTOR ** (jnp.arange(N_KERNELS) - N_KERNELS // 2)).astype(jnp.float32)
    diff = x[:, None, :] - x[None, :, :]
    l2 = jnp.sum(diff * diff, axis=-1)
    n = x.shape[0]
    bw = jnp.sum(l2) / (n * n - n)
    return jnp.sum(jnp.exp(-l2[None, ...] / (bw * multipliers)[:, None, None]), axis=0)


if __name__ == "__main__":
    key = jax.random.PRNGKey(0)

    # Test 1: small batch of feature vectors (module-typical shape).
    N, D = 8, 32
    x = jax.random.normal(key, (N, D), dtype=jnp.float32)
    out = jax.block_until_ready(rbf_pallas(x))
    ref = rbf_reference(x)
    assert out.shape == (N, N)
    assert jnp.allclose(out, ref, atol=1e-4, rtol=1e-4), "mismatch vs reference (small)"

    # Test 2: exercise the multi-tile grid and the K-blocked (D > 512) path.
    N2, D2 = 256, 520
    x2 = jax.random.normal(jax.random.PRNGKey(1), (N2, D2), dtype=jnp.float32)
    out2 = jax.block_until_ready(rbf_pallas(x2, tile_override=(128, 128)))
    ref2 = rbf_reference(x2)
    assert out2.shape == (N2, N2)
    assert jnp.allclose(out2, ref2, atol=2e-4, rtol=2e-4), "mismatch vs reference (tiled)"

    print("KERNEL_OK")
</pallas_src>

<mosaic_0001>
module attributes {stable_mosaic.version = 11 : i64} {
  func.func @_rbf_tile_kernel(%arg0: i32, %arg1: i32, %arg2: i32, %arg3: memref<1xf32, #tpu.memory_space<smem>>, %arg4: memref<128x32xf32, #tpu.memory_space<vmem>>, %arg5: memref<128x32xf32, #tpu.memory_space<vmem>>, %arg6: memref<128x1xf32, #tpu.memory_space<vmem>>, %arg7: memref<1x128xf32, #tpu.memory_space<vmem>>, %arg8: memref<128x128xf32, #tpu.memory_space<vmem>>, %arg9: memref<128x128xf32, #tpu.memory_space<vmem>>) attributes {dimension_semantics = [#tpu.dimension_semantics<parallel>, #tpu.dimension_semantics<parallel>, #tpu.dimension_semantics<arbitrary>], iteration_bounds = array<i64: 1, 1, 1>, scalar_prefetch = 0 : i64, scratch_operands = 1 : i64, tpu.core_type = #tpu.core_type<tc>, window_params = [{transform_indices = @transform_0, window_bounds = array<i64: 1>}, {transform_indices = @transform_1, window_bounds = array<i64: 128, 32>}, {transform_indices = @transform_2, window_bounds = array<i64: 128, 32>}, {transform_indices = @transform_3, window_bounds = array<i64: 128, 1>}, {transform_indices = @transform_4, window_bounds = array<i64: 1, 128>}, {transform_indices = @transform_5, window_bounds = array<i64: 128, 128>}]} {
    %c0_i32 = arith.constant 0 : i32
    %0 = arith.cmpi eq, %arg2, %c0_i32 : i32
    %1 = arith.extui %0 : i1 to i32
    %c0_i32_0 = arith.constant 0 : i32
    %2 = arith.cmpi ne, %1, %c0_i32_0 : i32
    scf.if %2 {
      %cst_12 = arith.constant 0.000000e+00 : f32
      %16 = vector.broadcast %cst_12 : f32 to vector<128x128xf32>
      %c0_13 = arith.constant 0 : index
      %c0_14 = arith.constant 0 : index
      %17 = vector.load %arg9[%c0_13, %c0_14] : memref<128x128xf32, #tpu.memory_space<vmem>>, vector<128x128xf32>
      tpu.vector_store %arg9[%c0_13, %c0_14], %16 {strides = array<i32>} : memref<128x128xf32, #tpu.memory_space<vmem>>, vector<128x128xf32>,
    } else {
    }
    %c0 = arith.constant 0 : index
    %3 = memref.load %arg3[%c0] : memref<1xf32, #tpu.memory_space<smem>>
    %c0_1 = arith.constant 0 : index
    %c0_2 = arith.constant 0 : index
    %4 = vector.load %arg4[%c0_1, %c0_2] : memref<128x32xf32, #tpu.memory_space<vmem>>, vector<128x32xf32>
    %cst = arith.constant -2.000000e+00 : f32
    %5 = arith.mulf %cst, %3 : f32
    %6 = vector.broadcast %5 : f32 to vector<128x32xf32>
    %7 = arith.mulf %4, %6 : vector<128x32xf32>
    %c0_3 = arith.constant 0 : index
    %c0_4 = arith.constant 0 : index
    %8 = vector.load %arg5[%c0_3, %c0_4] : memref<128x32xf32, #tpu.memory_space<vmem>>, vector<128x32xf32>
    %c0_5 = arith.constant 0 : index
    %c0_6 = arith.constant 0 : index
    %9 = vector.load %arg9[%c0_5, %c0_6] : memref<128x128xf32, #tpu.memory_space<vmem>>, vector<128x128xf32>
    %cst_7 = arith.constant dense<0.000000e+00> : vector<128x128xf32>
    %10 = tpu.matmul %7, %8, %cst_7 {dimension_numbers = #tpu.dot_dimension_numbers<[1], [1], [0], [0], [0, 0, 1, 0], [], []>} : vector<128x32xf32>, vector<128x32xf32>, vector<128x128xf32> -> vector<128x128xf32>
    %11 = arith.addf %9, %10 : vector<128x128xf32>
    %c0_8 = arith.constant 0 : index
    %c0_9 = arith.constant 0 : index
    %12 = vector.load %arg9[%c0_8, %c0_9] : memref<128x128xf32, #tpu.memory_space<vmem>>, vector<128x128xf32>
    tpu.vector_store %arg9[%c0_8, %c0_9], %11 {strides = array<i32>} : memref<128x128xf32, #tpu.memory_space<vmem>>, vector<128x128xf32>,
    %c0_i32_10 = arith.constant 0 : i32
    %13 = arith.cmpi eq, %arg2, %c0_i32_10 : i32
    %14 = arith.extui %13 : i1 to i32
    %c0_i32_11 = arith.constant 0 : i32
    %15 = arith.cmpi ne, %14, %c0_i32_11 : i32
    scf.if %15 {
      %c0_12 = arith.constant 0 : index
      %c0_13 = arith.constant 0 : index
      %16 = vector.load %arg6[%c0_12, %c0_13] : memref<128x1xf32, #tpu.memory_space<vmem>>, vector<128x1xf32>
      %17 = vector.broadcast %3 : f32 to vector<128x1xf32>
      %18 = arith.mulf %16, %17 : vector<128x1xf32>
      %c0_14 = arith.constant 0 : index
      %c0_15 = arith.constant 0 : index
      %19 = vector.load %arg7[%c0_14, %c0_15] : memref<1x128xf32, #tpu.memory_space<vmem>>, vector<1x128xf32>
      %20 = vector.broadcast %3 : f32 to vector<1x128xf32>
      %21 = arith.mulf %19, %20 : vector<1x128xf32>
      %22 = vector.broadcast %18 : vector<128x1xf32> to vector<128x128xf32>
      %23 = vector.broadcast %21 : vector<1x128xf32> to vector<128x128xf32>
      %24 = arith.addf %22, %23 : vector<128x128xf32>
      %c0_16 = arith.constant 0 : index
      %c0_17 = arith.constant 0 : index
      %25 = vector.load %arg9[%c0_16, %c0_17] : memref<128x128xf32, #tpu.memory_space<vmem>>, vector<128x128xf32>
      %26 = arith.addf %24, %25 : vector<128x128xf32>
      %cst_18 = arith.constant 0.000000e+00 : f32
      %27 = vector.broadcast %cst_18 : f32 to vector<128x128xf32>
      %28 = arith.minimumf %26, %27 : vector<128x128xf32>
      %29 = math.exp %28 : vector<128x128xf32>
      %30 = arith.mulf %29, %29 : vector<128x128xf32>
      %31 = arith.addf %29, %30 : vector<128x128xf32>
      %32 = arith.mulf %30, %30 : vector<128x128xf32>
      %33 = arith.addf %31, %32 : vector<128x128xf32>
      %34 = arith.mulf %32, %32 : vector<128x128xf32>
      %35 = arith.addf %33, %34 : vector<128x128xf32>
      %36 = arith.mulf %34, %34 : vector<128x128xf32>
      %37 = arith.addf %35, %36 : vector<128x128xf32>
      %c0_19 = arith.constant 0 : index
      %c0_20 = arith.constant 0 : index
      %38 = vector.load %arg8[%c0_19, %c0_20] : memref<128x128xf32, #tpu.memory_space<vmem>>, vector<128x128xf32>
      tpu.vector_store %arg8[%c0_19, %c0_20], %37 {strides = array<i32>} : memref<128x128xf32, #tpu.memory_space<vmem>>, vector<128x128xf32>,
    } else {
    }
    return
  }
  func.func @transform_0(%arg0: i32, %arg1: i32, %arg2: i32) -> i32 {
    %c0_i32 = arith.constant 0 : i32
    %c0_i32_0 = arith.constant 0 : i32
    return %c0_i32 : i32
  }
  func.func @transform_1(%arg0: i32, %arg1: i32, %arg2: i32) -> (i32, i32) {
    %c0_i32 = arith.constant 0 : i32
    return %arg0, %arg2 : i32, i32
  }
  func.func @transform_2(%arg0: i32, %arg1: i32, %arg2: i32) -> (i32, i32) {
    %c0_i32 = arith.constant 0 : i32
    return %arg1, %arg2 : i32, i32
  }
  func.func @transform_3(%arg0: i32, %arg1: i32, %arg2: i32) -> (i32, i32) {
    %c0_i32 = arith.constant 0 : i32
    %c0_i32_0 = arith.constant 0 : i32
    return %arg0, %c0_i32 : i32, i32
  }
  func.func @transform_4(%arg0: i32, %arg1: i32, %arg2: i32) -> (i32, i32) {
    %c0_i32 = arith.constant 0 : i32
    %c0_i32_0 = arith.constant 0 : i32
    return %c0_i32, %arg1 : i32, i32
  }
  func.func @transform_5(%arg0: i32, %arg1: i32, %arg2: i32) -> (i32, i32) {
    %c0_i32 = arith.constant 0 : i32
    return %arg0, %arg1 : i32, i32
  }
}

</mosaic_0001>

<bundles_post_ra>
// kernel: tpu_custom_call.1
= control target key start
LH: loop header
LB: loop body
LE: loop exit
PB: predicated region body
PF: predicated region fallthrough
CT: control target
= control target key end

     0   :  { %vm109_vm0 = vcmask 261120   ;;  %v827_v4 = vmov 0   ;;  %s1137_s0 = inlined_call_operand.<no memory space> [shape: f32[1], index: 0, kind: input, shape index: {}]   ;;  %s1138_s1 = inlined_call_operand.vmem [shape: f32[128,32], index: 1, kind: input, shape index: {}]   ;;  %s1139_s2 = inlined_call_operand.vmem [shape: f32[128,32], index: 2, kind: input, shape index: {}]   ;;  %s1140_s3 = inlined_call_operand.vmem [shape: f32[128,1], index: 3, kind: input, shape index: {}]   ;;  %s1141_s4 = inlined_call_operand.vmem [shape: f32[1,128], index: 4, kind: input, shape index: {}]   ;;  %s1142_s5 = inlined_call_operand.hbm [shape: f32[128,128], index: 5, kind: output, shape index: {}]  }
   0x1   :  { %v92_v0 = vld [vmem:[%s1139_s2 + $0x78] sm:$0xff]  ;;  %v867_v1 = vstv %s1137_s0  ;;  %v91_v2 = vld [vmem:[%s1139_s2 + $0x70] sm:$0xff]  ;;  %v306_v3 = vld [vmem:[%s1140_s3] sm:$0xff]  ;;  %766 = vset.pattern.permute.xlu0 %v827_v4  ;;  %767 = vset.pattern.permute.xlu1 %v827_v4 }
   0x2   :  { %682 = vmatpush.xpose.msk.msra.mxu0 %vm109_vm0, %v92_v0  ;;  %714 = vmatpush.xpose.msk.msra.mxu1 %vm109_vm0, %v92_v0  ;;  %v323_v5 = vmul.f32 %v867_v1, %v306_v3 }
   0x3   :  { %715 = vmatpush.xpose.msk.msra.mxu2 %vm109_vm0, %v92_v0  ;;  %716 = vmatpush.xpose.msk.msra.mxu3 %vm109_vm0, %v92_v0 }
   0x4   :  { %768 = vset.pattern.permute.xlu2 %v827_v4 }
   0x5   :  { %11 = vsyncpa [#allocation5], 0  ;;  %v308_v6 = vld [vmem:[%s1140_s3 + $0x10] sm:$0xff]  ;;  %v90_v7 = vld [vmem:[%s1139_s2 + $0x68] sm:$0xff]  ;;  %343 = vperm.xlu0 %766, %v323_v5   ;;  %s59_s30 = smul.f32 -2.0, %s1137_s0  ;;  %s830_s19 = smov 8  }
   0x6   :  { %683 = vmatpush.xpose.msk.msra.mxu0 %vm109_vm0, %v91_v2  ;;  %717 = vmatpush.xpose.msk.msra.mxu1 %vm109_vm0, %v91_v2  ;;  %v325_v8 = vmul.f32 %v867_v1, %v308_v6  ;;  %v307_v9 = vld [vmem:[%s1140_s3 + $0x8] sm:$0xff]  ;;  %v89_v10 = vld [vmem:[%s1139_s2 + $0x60] sm:$0xff]  ;;  %v309_v12 = vld [vmem:[%s1140_s3 + $0x18] sm:$0xff] }
   0x7   :  { %718 = vmatpush.xpose.msk.msra.mxu2 %vm109_vm0, %v91_v2  ;;  %719 = vmatpush.xpose.msk.msra.mxu3 %vm109_vm0, %v91_v2  ;;  %v324_v11 = vmul.f32 %v867_v1, %v307_v9  ;;  %v88_v13 = vld [vmem:[%s1139_s2 + $0x58] sm:$0xff]  ;;  %v326_v14 = vmul.f32 %v867_v1, %v309_v12  ;;  %v312_v15 = vld [vmem:[%s1140_s3 + $0x30] sm:$0xff]  ;;  %v86_v19 = vld [vmem:[%s1139_s2 + $0x48] sm:$0xff]  ;;  %v60_v48 = vstv %s59_s30 }
   0x8   :  { %353 = vperm.xlu1 %767, %v325_v8   ;;  %v87_v16 = vld [vmem:[%s1139_s2 + $0x50] sm:$0xff]  ;;  %v329_v17 = vmul.f32 %v867_v1, %v312_v15  ;;  %v313_v18 = vld [vmem:[%s1140_s3 + $0x38] sm:$0xff]  ;;  %v315_v21 = vld [vmem:[%s1140_s3 + $0x48] sm:$0xff] }
   0x9   :  { %v330_v20 = vmul.f32 %v867_v1, %v313_v18  ;;  %v85_v22 = vld [vmem:[%s1139_s2 + $0x40] sm:$0xff]  ;;  %v332_v23 = vmul.f32 %v867_v1, %v315_v21  ;;  %v316_v25 = vld [vmem:[%s1140_s3 + $0x50] sm:$0xff]  ;;  %v84_v26 = vld [vmem:[%s1139_s2 + $0x38] sm:$0xff] }
   0xa   :  { %684 = vmatpush.xpose.msk.msra.mxu0 %vm109_vm0, %v90_v7  ;;  %720 = vmatpush.xpose.msk.msra.mxu1 %vm109_vm0, %v90_v7  ;;  %v310_v24 = vld [vmem:[%s1140_s3 + $0x20] sm:$0xff]  ;;  %v333_v28 = vmul.f32 %v867_v1, %v316_v25  ;;  %v311_v30 = vld [vmem:[%s1140_s3 + $0x28] sm:$0xff]  ;;  %v83_v32 = vld [vmem:[%s1139_s2 + $0x30] sm:$0xff] }
   0xb   :  { %721 = vmatpush.xpose.msk.msra.mxu2 %vm109_vm0, %v90_v7  ;;  %722 = vmatpush.xpose.msk.msra.mxu3 %vm109_vm0, %v90_v7  ;;  %v327_v27 = vmul.f32 %v867_v1, %v310_v24  ;;  %v318_v29 = vld [vmem:[%s1140_s3 + $0x60] sm:$0xff]  ;;  %v319_v31 = vld [vmem:[%s1140_s3 + $0x68] sm:$0xff]  ;;  %v328_v34 = vmul.f32 %v867_v1, %v311_v30  ;;  %v321_v37 = vld [vmem:[%s1140_s3 + $0x78] sm:$0xff] }
   0xc   :  { %v335_v33 = vmul.f32 %v867_v1, %v318_v29  ;;  %v336_v35 = vmul.f32 %v867_v1, %v319_v31  ;;  %v82_v36 = vld [vmem:[%s1139_s2 + $0x28] sm:$0xff]  ;;  %v314_v38 = vld [vmem:[%s1140_s3 + $0x40] sm:$0xff]  ;;  %v338_v40 = vmul.f32 %v867_v1, %v321_v37  ;;  %v80_v42 = vld [vmem:[%s1139_s2 + $0x18] sm:$0xff] }
   0xd   :  { %348 = vperm.xlu0 %766, %v324_v11   ;;  %363 = vperm.xlu2 %768, %v327_v27   ;;  %v81_v39 = vld [vmem:[%s1139_s2 + $0x20] sm:$0xff]  ;;  %v331_v41 = vmul.f32 %v867_v1, %v314_v38  ;;  %v317_v43 = vld [vmem:[%s1140_s3 + $0x58] sm:$0xff]  ;;  %v79_v44 = vld [vmem:[%s1139_s2 + $0x10] sm:$0xff] }
   0xe   :  { %685 = vmatpush.xpose.msk.msra.mxu0 %vm109_vm0, %v89_v10  ;;  %723 = vmatpush.xpose.msk.msra.mxu1 %vm109_vm0, %v89_v10  ;;  %v334_v45 = vmul.f32 %v867_v1, %v317_v43  ;;  %v78_v46 = vld [vmem:[%s1139_s2 + $0x8] sm:$0xff]  ;;  %v43_v47 = vld [vmem:[%s1138_s1] sm:$0xff]  ;;  %v320_v53 = vld [vmem:[%s1140_s3 + $0x70] sm:$0xff]  ;;  %s829_s3 = smov 128  }
   0xf   :  { %724 = vmatpush.xpose.msk.msra.mxu2 %vm109_vm0, %v89_v10  ;;  %725 = vmatpush.xpose.msk.msra.mxu3 %vm109_vm0, %v89_v10  ;;  %v47_v49 = vld [vmem:[%s1138_s1 + $0x20] sm:$0xff]  ;;  %v61_v54 = vmul.f32 %v60_v48, %v43_v47  ;;  %v337_v58 = vmul.f32 %v867_v1, %v320_v53  ;;  %v44_v59 = vld [vmem:[%s1138_s1 + $0x8] sm:$0xff]  ;;  %v45_v4 = vld [vmem:[%s1138_s1 + $0x10] sm:$0xff] }
  0x10   :  { %358 = vperm.xlu1 %767, %v326_v14   ;;  %v77_v50 = vld [vmem:[%s1139_s2] sm:$0xff]  ;;  %v65_v55 = vmul.f32 %v60_v48, %v47_v49  ;;  %v48_v60 = vld [vmem:[%s1138_s1 + $0x28] sm:$0xff]  ;;  %v62_v63 = vmul.f32 %v60_v48, %v44_v59  ;;  %v49_v5 = vld [vmem:[%s1138_s1 + $0x30] sm:$0xff]  ;;  %v63_v8 = vmul.f32 %v60_v48, %v45_v4  ;;  %s670_s2 = sshll.u32 %s1142_s5, 4  ;;  %s671_s2 = int_to_ptr.hbm [resolvable:$true] %s670_s2 }
  0x11   :  { %v51_v51 = vld [vmem:[%s1138_s1 + $0x40] sm:$0xff]  ;;  %v52_v61 = vld [vmem:[%s1138_s1 + $0x48] sm:$0xff]  ;;  %v66_v0 = vmul.f32 %v60_v48, %v48_v60  ;;  %v53_v6 = vld [vmem:[%s1138_s1 + $0x50] sm:$0xff]  ;;  %v67_v9 = vmul.f32 %v60_v48, %v49_v5 }
  0x12   :  { %686 = vmatpush.xpose.msk.msra.mxu0 %vm109_vm0, %v88_v13  ;;  %726 = vmatpush.xpose.msk.msra.mxu1 %vm109_vm0, %v88_v13  ;;  %v55_v52 = vld [vmem:[%s1138_s1 + $0x60] sm:$0xff]  ;;  %v69_v56 = vmul.f32 %v60_v48, %v51_v51  ;;  %v56_v62 = vld [vmem:[%s1138_s1 + $0x68] sm:$0xff]  ;;  %v70_v2 = vmul.f32 %v60_v48, %v52_v61  ;;  %v57_v7 = vld [vmem:[%s1138_s1 + $0x70] sm:$0xff]  ;;  %v71_v10 = vmul.f32 %v60_v48, %v53_v6 }
  0x13   :  { %727 = vmatpush.xpose.msk.msra.mxu2 %vm109_vm0, %v88_v13  ;;  %728 = vmatpush.xpose.msk.msra.mxu3 %vm109_vm0, %v88_v13  ;;  %v73_v57 = vmul.f32 %v60_v48, %v55_v52  ;;  %v74_v3 = vmul.f32 %v60_v48, %v56_v62  ;;  %v75_v11 = vmul.f32 %v60_v48, %v57_v7  ;;  %v46_v12 = vld [vmem:[%s1138_s1 + $0x18] sm:$0xff]  ;;  %v339_v27 = vld [vmem:[%s1141_s4] sm:$0x1]  ;;  %s828_s4 = smov [#allocation4]  }
  0x14   :  { %v50_v13 = vld [vmem:[%s1138_s1 + $0x38] sm:$0xff]  ;;  %s668_s16 = sshll.u32 %s828_s4, 4  ;;  %s669_s16 = int_to_ptr.vmem [resolvable:$true] %s668_s16 }
  0x15   :  { %373 = vperm.xlu0 %766, %v329_v17   ;;  %368 = vperm.xlu2 %768, %v328_v34   ;;  %v54_v14 = vld [vmem:[%s1138_s1 + $0x58] sm:$0xff]  ;;  %v68_v17 = vmul.f32 %v60_v48, %v50_v13 }
  0x16   :  { %687 = vmatpush.xpose.msk.msra.mxu0 %vm109_vm0, %v87_v16  ;;  %729 = vmatpush.xpose.msk.msra.mxu1 %vm109_vm0, %v87_v16  ;;  %v58_v15 = vld [vmem:[%s1138_s1 + $0x78] sm:$0xff]  ;;  %v72_v18 = vmul.f32 %v60_v48, %v54_v14 }
  0x17   :  { %730 = vmatpush.xpose.msk.msra.mxu2 %vm109_vm0, %v87_v16  ;;  %731 = vmatpush.xpose.msk.msra.mxu3 %vm109_vm0, %v87_v16  ;;  %v64_v16 = vmul.f32 %v60_v48, %v46_v12 }
  0x18   :  { %378 = vperm.xlu1 %767, %v330_v20  }
  0x1a   :  { %688 = vmatpush.xpose.msk.msra.mxu0 %vm109_vm0, %v86_v19  ;;  %732 = vmatpush.xpose.msk.msra.mxu1 %vm109_vm0, %v86_v19 }
  0x1b   :  { %733 = vmatpush.xpose.msk.msra.mxu2 %vm109_vm0, %v86_v19  ;;  %734 = vmatpush.xpose.msk.msra.mxu3 %vm109_vm0, %v86_v19  ;;  %v76_v19 = vmul.f32 %v60_v48, %v58_v15 }
  0x1d   :  { %388 = vperm.xlu0 %766, %v332_v23   ;;  %383 = vperm.xlu2 %768, %v331_v41  }
  0x1e   :  { %689 = vmatpush.xpose.msk.msra.mxu0 %vm109_vm0, %v85_v22  ;;  %735 = vmatpush.xpose.msk.msra.mxu1 %vm109_vm0, %v85_v22 }
  0x1f   :  { %736 = vmatpush.xpose.msk.msra.mxu2 %vm109_vm0, %v85_v22  ;;  %737 = vmatpush.xpose.msk.msra.mxu3 %vm109_vm0, %v85_v22 }
  0x20   :  { %393 = vperm.xlu1 %767, %v333_v28   ;;  %v340_v28 = vmul.f32 %v339_v27, %v867_v1 }
  0x22   :  { %690 = vmatpush.xpose.msk.msra.mxu0 %vm109_vm0, %v84_v26  ;;  %738 = vmatpush.xpose.msk.msra.mxu1 %vm109_vm0, %v84_v26 }
  0x23   :  { %739 = vmatpush.xpose.msk.msra.mxu2 %vm109_vm0, %v84_v26  ;;  %740 = vmatpush.xpose.msk.msra.mxu3 %vm109_vm0, %v84_v26 }
  0x25   :  { %403 = vperm.xlu0 %766, %v335_v33   ;;  %398 = vperm.xlu2 %768, %v334_v45  }
  0x26   :  { %691 = vmatpush.xpose.msk.msra.mxu0 %vm109_vm0, %v83_v32  ;;  %741 = vmatpush.xpose.msk.msra.mxu1 %vm109_vm0, %v83_v32 }
  0x27   :  { %742 = vmatpush.xpose.msk.msra.mxu2 %vm109_vm0, %v83_v32  ;;  %743 = vmatpush.xpose.msk.msra.mxu3 %vm109_vm0, %v83_v32  ;;  %v422_v32 = vperm.slane %v340_v28, 0 }
  0x28   :  { %408 = vperm.xlu1 %767, %v336_v35  }
  0x2a   :  { %692 = vmatpush.xpose.msk.msra.mxu0 %vm109_vm0, %v82_v36  ;;  %744 = vmatpush.xpose.msk.msra.mxu1 %vm109_vm0, %v82_v36 }
  0x2b   :  { %745 = vmatpush.xpose.msk.msra.mxu2 %vm109_vm0, %v82_v36  ;;  %746 = vmatpush.xpose.msk.msra.mxu3 %vm109_vm0, %v82_v36 }
  0x2d   :  { %418 = vperm.xlu0 %766, %v338_v40   ;;  %413 = vperm.xlu2 %768, %v337_v58  }
  0x2e   :  { %693 = vmatpush.xpose.msk.msra.mxu0 %vm109_vm0, %v81_v39  ;;  %747 = vmatpush.xpose.msk.msra.mxu1 %vm109_vm0, %v81_v39 }
  0x2f   :  { %748 = vmatpush.xpose.msk.msra.mxu2 %vm109_vm0, %v81_v39  ;;  %749 = vmatpush.xpose.msk.msra.mxu3 %vm109_vm0, %v81_v39 }
  0x32   :  { %694 = vmatpush.xpose.msk.msra.mxu0 %vm109_vm0, %v80_v42  ;;  %750 = vmatpush.xpose.msk.msra.mxu1 %vm109_vm0, %v80_v42 }
  0x33   :  { %751 = vmatpush.xpose.msk.msra.mxu2 %vm109_vm0, %v80_v42  ;;  %752 = vmatpush.xpose.msk.msra.mxu3 %vm109_vm0, %v80_v42 }
  0x36   :  { %695 = vmatpush.xpose.msk.msra.mxu0 %vm109_vm0, %v79_v44  ;;  %753 = vmatpush.xpose.msk.msra.mxu1 %vm109_vm0, %v79_v44 }
  0x37   :  { %754 = vmatpush.xpose.msk.msra.mxu2 %vm109_vm0, %v79_v44  ;;  %755 = vmatpush.xpose.msk.msra.mxu3 %vm109_vm0, %v79_v44 }
  0x3a   :  { %696 = vmatpush.xpose.msk.msra.mxu0 %vm109_vm0, %v78_v46  ;;  %756 = vmatpush.xpose.msk.msra.mxu1 %vm109_vm0, %v78_v46 }
  0x3b   :  { %757 = vmatpush.xpose.msk.msra.mxu2 %vm109_vm0, %v78_v46  ;;  %758 = vmatpush.xpose.msk.msra.mxu3 %vm109_vm0, %v78_v46 }
  0x3e   :  { %697 = vmatpush.xpose.msk.msra.mxu0 %vm109_vm0, %v77_v50  ;;  %759 = vmatpush.xpose.msk.msra.mxu1 %vm109_vm0, %v77_v50 }
  0x3f   :  { %760 = vmatpush.xpose.msk.msra.mxu2 %vm109_vm0, %v77_v50  ;;  %761 = vmatpush.xpose.msk.msra.mxu3 %vm109_vm0, %v77_v50 }
  0x41   :  { %698 = vmatmul.msk.f32.vlgmr.msra.gmra.mxu0 %vm109_vm0, %v61_v54  ;;  %702 = vmatmul.msk.f32.vlgmr.msra.gmra.mxu1 %vm109_vm0, %v65_v55 }
  0x42   :  { %706 = vmatmul.msk.f32.vlgmr.msra.gmra.mxu2 %vm109_vm0, %v69_v56  ;;  %710 = vmatmul.msk.f32.vlgmr.msra.gmra.mxu3 %vm109_vm0, %v73_v57 }
  0x49   :  { %699 = vmatmul.msk.f32.gmra.mxu0 %vm109_vm0, %v62_v63  ;;  %703 = vmatmul.msk.f32.gmra.mxu1 %vm109_vm0, %v66_v0 }
  0x4a   :  { %707 = vmatmul.msk.f32.gmra.mxu2 %vm109_vm0, %v70_v2  ;;  %711 = vmatmul.msk.f32.gmra.mxu3 %vm109_vm0, %v74_v3 }
  0x51   :  { %700 = vmatmul.msk.f32.gmra.mxu0 %vm109_vm0, %v63_v8  ;;  %704 = vmatmul.msk.f32.gmra.mxu1 %vm109_vm0, %v67_v9 }
  0x52   :  { %708 = vmatmul.msk.f32.gmra.mxu2 %vm109_vm0, %v71_v10  ;;  %712 = vmatmul.msk.f32.gmra.mxu3 %vm109_vm0, %v75_v11 }
  0x59   :  { %701 = vmatmul.msk.f32.gmra.mxu0 %vm109_vm0, %v64_v16  ;;  %705 = vmatmul.msk.f32.gmra.mxu1 %vm109_vm0, %v68_v17 }
  0x5a   :  { %709 = vmatmul.msk.f32.gmra.mxu2 %vm109_vm0, %v72_v18  ;;  %713 = vmatmul.msk.f32.gmra.mxu3 %vm109_vm0, %v76_v19 }
  0x67   :  { %v364_v23 = vpop.permute.xlu2 %363 }
  0x68   :  { %v428_v34 = vadd.f32 %v422_v32, %v364_v23 }
  0x6f   :  { %v369_v26 = vpop.permute.xlu2 %368 }
  0x70   :  { %v429_v48 = vadd.f32 %v422_v32, %v369_v26 }
  0x77   :  { %v344_v20 = vpop.permute.xlu0 %343  ;;  %v384_v31 = vpop.permute.xlu2 %383 }
  0x78   :  { %v424_v33 = vadd.f32 %v422_v32, %v344_v20  ;;  %v432_v46 = vadd.f32 %v422_v32, %v384_v31 }
  0x7a   :  { %v354_v21 = vpop.permute.xlu1 %353 }
  0x7b   :  { %v426_v59 = vadd.f32 %v422_v32, %v354_v21 }
  0x7f   :  { %v349_v22 = vpop.permute.xlu0 %348  ;;  %v399_v41 = vpop.permute.xlu2 %398 }
  0x80   :  { %v425_v1 = vadd.f32 %v422_v32, %v349_v22  ;;  %v1117_v9 = vadd.f32 %v422_v32, %v399_v41 }
  0x82   :  { %v359_v24 = vpop.permute.xlu1 %358 }
  0x83   :  { %v1113_v60 = vadd.f32 %v422_v32, %v359_v24 }
  0x87   :  { %v374_v25 = vpop.permute.xlu0 %373  ;;  %v414_v4 = vpop.permute.xlu2 %413 }
  0x88   :  { %v430_v0 = vadd.f32 %v422_v32, %v374_v25  ;;  %v1123_v17 = vadd.f32 %v422_v32, %v414_v4 }
  0x8a   :  { %v379_v29 = vpop.permute.xlu1 %378 }
  0x8b   :  { %v1115_v2 = vadd.f32 %v422_v32, %v379_v29 }
  0x8f   :  { %v389_v30 = vpop.permute.xlu0 %388 }
  0x90   :  { %v433_v8 = vadd.f32 %v422_v32, %v389_v30 }
  0x92   :  { %v394_v37 = vpop.permute.xlu1 %393 }
  0x93   :  { %v1119_v13 = vadd.f32 %v422_v32, %v394_v37 }
  0x97   :  { %v404_v40 = vpop.permute.xlu0 %403 }
  0x98   :  { %v436_v47 = vadd.f32 %v422_v32, %v404_v40 }
  0x9a   :  { %v409_v61 = vpop.permute.xlu1 %408 }
  0x9b   :  { %v437_v14 = vadd.f32 %v422_v32, %v409_v61 }
  0x9f   :  { %v419_v3 = vpop.permute.xlu0 %418 }
  0xa0   :  { %v1121_v16 = vadd.f32 %v422_v32, %v419_v3 }
  0xbe   :  { %v223_v35 = vpop.f32.mrf.mxu0  ;;  %v235_v36 = vpop.f32.mrf.mxu1 }
  0xbf   :  { %v456_v38 = vadd.f32 %v424_v33, %v223_v35  ;;  %v460_v39 = vadd.f32 %v428_v34, %v235_v36 }
  0xc1   :  { %v472_v42 = vmin.f32 %v456_v38, 0.0  ;;  %v476_v43 = vmin.f32 %v460_v39, 0.0 }
  0xc3   :  { %v488_v44 = vmul.f32 1.442695, %v472_v42  ;;  %v496_v45 = vmul.f32 1.442695, %v476_v43 }
  0xc5   :  { %769 = vpow2.f32 %v488_v44  ;;  %v247_v49 = vpop.f32.mrf.mxu2  ;;  %v259_v50 = vpop.f32.mrf.mxu3 }
  0xc6   :  { %771 = vpow2.f32 %v496_v45  ;;  %v464_v51 = vadd.f32 %v432_v46, %v247_v49  ;;  %v468_v52 = vadd.f32 %v436_v47, %v259_v50  ;;  %v226_v53 = vpop.f32.mrf.mxu0  ;;  %v238_v54 = vpop.f32.mrf.mxu1 }
  0xc7   :  { %v457_v55 = vadd.f32 %v425_v1, %v226_v53  ;;  %v461_v56 = vadd.f32 %v429_v48, %v238_v54 }
  0xc8   :  { %v480_v57 = vmin.f32 %v464_v51, 0.0  ;;  %v484_v58 = vmin.f32 %v468_v52, 0.0 }
  0xc9   :  { %v473_v62 = vmin.f32 %v457_v55, 0.0  ;;  %v477_v63 = vmin.f32 %v461_v56, 0.0 }
  0xca   :  { %v504_v5 = vmul.f32 1.442695, %v480_v57  ;;  %v512_v6 = vmul.f32 1.442695, %v484_v58 }
  0xcb   :  { %v770_v7 = vpop.eup %769  ;;  %v490_v10 = vmul.f32 1.442695, %v473_v62  ;;  %v498_v11 = vmul.f32 1.442695, %v477_v63 }
  0xcc   :  { %v772_v12 = vpop.eup %771  ;;  %v520_v15 = vmul.f32 %v770_v7, %v770_v7  ;;  %773 = vpow2.f32 %v504_v5 }
  0xcd   :  { %v524_v18 = vmul.f32 %v772_v12, %v772_v12  ;;  %775 = vpow2.f32 %v512_v6  ;;  %v250_v19 = vpop.f32.mrf.mxu2  ;;  %v262_v20 = vpop.f32.mrf.mxu3 }
  0xce   :  { %v536_v21 = vadd.f32 %v770_v7, %v520_v15  ;;  %v552_v22 = vmul.f32 %v520_v15, %v520_v15  ;;  %777 = vpow2.f32 %v490_v10  ;;  %v465_v23 = vadd.f32 %v433_v8, %v250_v19  ;;  %v229_v24 = vpop.f32.mrf.mxu0  ;;  %v241_v25 = vpop.f32.mrf.mxu1 }
  0xcf   :  { %v540_v26 = vadd.f32 %v772_v12, %v524_v18  ;;  %v556_v27 = vmul.f32 %v524_v18, %v524_v18  ;;  %779 = vpow2.f32 %v498_v11  ;;  %v469_v28 = vadd.f32 %v437_v14, %v262_v20 }
  0xd0   :  { %v568_v29 = vadd.f32 %v552_v22, %v536_v21  ;;  %v584_v30 = vmul.f32 %v552_v22, %v552_v22  ;;  %v481_v31 = vmin.f32 %v465_v23, 0.0  ;;  %v458_v33 = vadd.f32 %v426_v59, %v229_v24 }
  0xd1   :  { %v572_v32 = vadd.f32 %v556_v27, %v540_v26  ;;  %v588_v34 = vmul.f32 %v556_v27, %v556_v27  ;;  %v485_v35 = vmin.f32 %v469_v28, 0.0  ;;  %v1125_v36 = vadd.f32 %v430_v0, %v241_v25 }
  0xd2   :  { %v774_v37 = vpop.eup %773  ;;  %v600_v38 = vadd.f32 %v584_v30, %v568_v29  ;;  %v616_v39 = vmul.f32 %v584_v30, %v584_v30  ;;  %v506_v40 = vmul.f32 1.442695, %v481_v31  ;;  %v474_v41 = vmin.f32 %v458_v33, 0.0 }
  0xd3   :  { %v776_v42 = vpop.eup %775  ;;  %v604_v43 = vadd.f32 %v588_v34, %v572_v32  ;;  %v620_v44 = vmul.f32 %v588_v34, %v588_v34  ;;  %v528_v45 = vmul.f32 %v774_v37, %v774_v37  ;;  %v514_v46 = vmul.f32 1.442695, %v485_v35 }
  0xd4   :  { %v778_v47 = vpop.eup %777  ;;  %v632_v1 = vadd.f32 %v616_v39, %v600_v38  ;;  %v532_v48 = vmul.f32 %v776_v42, %v776_v42  ;;  %781 = vpow2.f32 %v506_v40  ;;  %v492_v49 = vmul.f32 1.442695, %v474_v41 }
  0xd5   :  { %v780_v50 = vpop.eup %779  ;;  %v636_v51 = vadd.f32 %v620_v44, %v604_v43  ;;  %v544_v52 = vadd.f32 %v774_v37, %v528_v45  ;;  %v560_v53 = vmul.f32 %v528_v45, %v528_v45  ;;  %v521_v54 = vmul.f32 %v778_v47, %v778_v47  ;;  %v253_v63 = vpop.f32.mrf.mxu2 }
  0xd6   :  { %648 = vst [vmem:[#allocation4] sm:$0xff] %v632_v1  ;;  %v548_v55 = vadd.f32 %v776_v42, %v532_v48  ;;  %v564_v56 = vmul.f32 %v532_v48, %v532_v48  ;;  %v525_v57 = vmul.f32 %v780_v50, %v780_v50  ;;  %783 = vpow2.f32 %v514_v46  ;;  %v265_v11 = vpop.f32.mrf.mxu3  ;;  %v232_v33 = vpop.f32.mrf.mxu0 }
  0xd7   :  { %652 = vst [vmem:[#allocation4 + $0x20] sm:$0xff] %v636_v51  ;;  %v576_v58 = vadd.f32 %v560_v53, %v544_v52  ;;  %v592_v59 = vmul.f32 %v560_v53, %v560_v53  ;;  %v537_v61 = vadd.f32 %v778_v47, %v521_v54  ;;  %v553_v62 = vmul.f32 %v521_v54, %v521_v54 }
  0xd8   :  { %v580_v0 = vadd.f32 %v564_v56, %v548_v55  ;;  %v596_v3 = vmul.f32 %v564_v56, %v564_v56  ;;  %v541_v4 = vadd.f32 %v780_v50, %v525_v57  ;;  %v557_v5 = vmul.f32 %v525_v57, %v525_v57 }
  0xd9   :  { %v608_v6 = vadd.f32 %v592_v59, %v576_v58  ;;  %v624_v7 = vmul.f32 %v592_v59, %v592_v59  ;;  %v569_v8 = vadd.f32 %v553_v62, %v537_v61  ;;  %v585_v10 = vmul.f32 %v553_v62, %v553_v62 }
  0xda   :  { %v782_v12 = vpop.eup %781  ;;  %v612_v14 = vadd.f32 %v596_v3, %v580_v0  ;;  %v628_v15 = vmul.f32 %v596_v3, %v596_v3  ;;  %v573_v18 = vadd.f32 %v557_v5, %v541_v4  ;;  %v589_v19 = vmul.f32 %v557_v5, %v557_v5 }
  0xdb   :  { %v640_v20 = vadd.f32 %v624_v7, %v608_v6  ;;  %v601_v21 = vadd.f32 %v585_v10, %v569_v8  ;;  %v617_v22 = vmul.f32 %v585_v10, %v585_v10  ;;  %v529_v23 = vmul.f32 %v782_v12, %v782_v12 }
  0xdc   :  { %v784_v24 = vpop.eup %783  ;;  %v644_v25 = vadd.f32 %v628_v15, %v612_v14  ;;  %v605_v26 = vadd.f32 %v589_v19, %v573_v18  ;;  %v621_v27 = vmul.f32 %v589_v19, %v589_v19  ;;  %785 = vpow2.f32 %v492_v49 }
  0xdd   :  { %656 = vst [vmem:[#allocation4 + $0x40] sm:$0xff] %v640_v20  ;;  %v633_v28 = vadd.f32 %v617_v22, %v601_v21  ;;  %v545_v29 = vadd.f32 %v782_v12, %v529_v23  ;;  %v561_v30 = vmul.f32 %v529_v23, %v529_v23  ;;  %v533_v31 = vmul.f32 %v784_v24, %v784_v24  ;;  %v256_v49 = vpop.f32.mrf.mxu2 }
  0xde   :  { %660 = vst [vmem:[#allocation4 + $0x60] sm:$0xff] %v644_v25  ;;  %v637_v32 = vadd.f32 %v621_v27, %v605_v26  ;;  %v478_v34 = vmin.f32 %v1125_v36, 0.0  ;;  %v466_v35 = vadd.f32 %v1119_v13, %v253_v63  ;;  %v470_v37 = vadd.f32 %v1123_v17, %v265_v11  ;;  %v244_v36 = vpop.f32.mrf.mxu1  ;;  %v268_v56 = vpop.f32.mrf.mxu3 }
  0xdf   :  { %649 = vst [vmem:[#allocation4 + $0x8] sm:$0xff] %v633_v28  ;;  %v577_v38 = vadd.f32 %v561_v30, %v545_v29  ;;  %v593_v39 = vmul.f32 %v561_v30, %v561_v30  ;;  %v549_v40 = vadd.f32 %v784_v24, %v533_v31  ;;  %v565_v41 = vmul.f32 %v533_v31, %v533_v31 }
  0xe0   :  { %653 = vst [vmem:[#allocation4 + $0x28] sm:$0xff] %v637_v32  ;;  %v500_v42 = vmul.f32 1.442695, %v478_v34  ;;  %v482_v43 = vmin.f32 %v466_v35, 0.0  ;;  %v486_v44 = vmin.f32 %v470_v37, 0.0  ;;  %v459_v45 = vadd.f32 %v1113_v60, %v232_v33 }
  0xe1   :  { %v609_v46 = vadd.f32 %v593_v39, %v577_v38  ;;  %v625_v47 = vmul.f32 %v593_v39, %v593_v39  ;;  %v581_v1 = vadd.f32 %v565_v41, %v549_v40  ;;  %v597_v48 = vmul.f32 %v565_v41, %v565_v41 }
  0xe2   :  { %v786_v13 = vpop.eup %785  ;;  %787 = vpow2.f32 %v500_v42  ;;  %v508_v17 = vmul.f32 1.442695, %v482_v43  ;;  %v516_v50 = vmul.f32 1.442695, %v486_v44  ;;  %v475_v51 = vmin.f32 %v459_v45, 0.0 }
  0xe3   :  { %v641_v52 = vadd.f32 %v625_v47, %v609_v46  ;;  %v613_v53 = vadd.f32 %v597_v48, %v581_v1  ;;  %v629_v54 = vmul.f32 %v597_v48, %v597_v48  ;;  %v522_v55 = vmul.f32 %v786_v13, %v786_v13 }
  0xe4   :  { %789 = vpow2.f32 %v508_v17  ;;  %v494_v57 = vmul.f32 1.442695, %v475_v51  ;;  %v463_v60 = vadd.f32 %v1115_v2, %v244_v36  ;;  %v467_v58 = vadd.f32 %v1117_v9, %v256_v49 }
  0xe5   :  { %657 = vst [vmem:[#allocation4 + $0x48] sm:$0xff] %v641_v52  ;;  %v645_v59 = vadd.f32 %v629_v54, %v613_v53  ;;  %v538_v61 = vadd.f32 %v786_v13, %v522_v55  ;;  %v554_v62 = vmul.f32 %v522_v55, %v522_v55  ;;  %791 = vpow2.f32 %v516_v50 }
  0xe6   :  { %793 = vpow2.f32 %v494_v57  ;;  %v479_v63 = vmin.f32 %v463_v60, 0.0  ;;  %v483_v0 = vmin.f32 %v467_v58, 0.0  ;;  %v471_v3 = vadd.f32 %v1121_v16, %v268_v56 }
  0xe7   :  { %661 = vst [vmem:[#allocation4 + $0x68] sm:$0xff] %v645_v59  ;;  %v570_v4 = vadd.f32 %v554_v62, %v538_v61  ;;  %v586_v5 = vmul.f32 %v554_v62, %v554_v62 }
  0xe8   :  { %v788_v6 = vpop.eup %787  ;;  %v502_v7 = vmul.f32 1.442695, %v479_v63  ;;  %v510_v8 = vmul.f32 1.442695, %v483_v0  ;;  %v487_v10 = vmin.f32 %v471_v3, 0.0 }
  0xe9   :  { %v602_v2 = vadd.f32 %v586_v5, %v570_v4  ;;  %v618_v11 = vmul.f32 %v586_v5, %v586_v5  ;;  %v526_v9 = vmul.f32 %v788_v6, %v788_v6 }
  0xea   :  { %v790_v12 = vpop.eup %789  ;;  %795 = vpow2.f32 %v502_v7  ;;  %v518_v14 = vmul.f32 1.442695, %v487_v10 }
  0xeb   :  { %v792_v15 = vpop.eup %791  ;;  %v634_v18 = vadd.f32 %v618_v11, %v602_v2  ;;  %v542_v19 = vadd.f32 %v788_v6, %v526_v9  ;;  %v558_v20 = vmul.f32 %v526_v9, %v526_v9  ;;  %v530_v21 = vmul.f32 %v790_v12, %v790_v12 }
  0xec   :  { %v794_v22 = vpop.eup %793  ;;  %v534_v16 = vmul.f32 %v792_v15, %v792_v15  ;;  %797 = vpow2.f32 %v510_v8 }
  0xed   :  { %650 = vst [vmem:[#allocation4 + $0x10] sm:$0xff] %v634_v18  ;;  %v574_v23 = vadd.f32 %v558_v20, %v542_v19  ;;  %v590_v24 = vmul.f32 %v558_v20, %v558_v20  ;;  %v546_v25 = vadd.f32 %v790_v12, %v530_v21  ;;  %v562_v26 = vmul.f32 %v530_v21, %v530_v21 }
  0xee   :  { %v550_v27 = vadd.f32 %v792_v15, %v534_v16  ;;  %v566_v28 = vmul.f32 %v534_v16, %v534_v16  ;;  %v523_v29 = vmul.f32 %v794_v22, %v794_v22  ;;  %799 = vpow2.f32 %v518_v14 }
  0xef   :  { %v606_v30 = vadd.f32 %v590_v24, %v574_v23  ;;  %v622_v31 = vmul.f32 %v590_v24, %v590_v24  ;;  %v578_v33 = vadd.f32 %v562_v26, %v546_v25  ;;  %v594_v32 = vmul.f32 %v562_v26, %v562_v26 }
  0xf0   :  { %v796_v34 = vpop.eup %795  ;;  %v582_v35 = vadd.f32 %v566_v28, %v550_v27  ;;  %v598_v37 = vmul.f32 %v566_v28, %v566_v28  ;;  %v539_v38 = vadd.f32 %v794_v22, %v523_v29  ;;  %v555_v39 = vmul.f32 %v523_v29, %v523_v29 }
  0xf1   :  { %v638_v40 = vadd.f32 %v622_v31, %v606_v30  ;;  %v610_v41 = vadd.f32 %v594_v32, %v578_v33  ;;  %v626_v42 = vmul.f32 %v594_v32, %v594_v32  ;;  %v527_v43 = vmul.f32 %v796_v34, %v796_v34 }
  0xf2   :  { %v798_v44 = vpop.eup %797  ;;  %v614_v45 = vadd.f32 %v598_v37, %v582_v35  ;;  %v630_v46 = vmul.f32 %v598_v37, %v598_v37  ;;  %v571_v47 = vadd.f32 %v555_v39, %v539_v38  ;;  %v587_v1 = vmul.f32 %v555_v39, %v555_v39 }
  0xf3   :  { %654 = vst [vmem:[#allocation4 + $0x30] sm:$0xff] %v638_v40  ;;  %v642_v48 = vadd.f32 %v626_v42, %v610_v41  ;;  %v543_v36 = vadd.f32 %v796_v34, %v527_v43  ;;  %v559_v49 = vmul.f32 %v527_v43, %v527_v43  ;;  %v531_v13 = vmul.f32 %v798_v44, %v798_v44 }
  0xf4   :  { %v800_v17 = vpop.eup %799  ;;  %v646_v50 = vadd.f32 %v630_v46, %v614_v45  ;;  %v603_v51 = vadd.f32 %v587_v1, %v571_v47  ;;  %v619_v52 = vmul.f32 %v587_v1, %v587_v1 }
  0xf5   :  { %658 = vst [vmem:[#allocation4 + $0x50] sm:$0xff] %v642_v48  ;;  %v575_v53 = vadd.f32 %v559_v49, %v543_v36  ;;  %v591_v54 = vmul.f32 %v559_v49, %v559_v49  ;;  %v547_v55 = vadd.f32 %v798_v44, %v531_v13  ;;  %v563_v56 = vmul.f32 %v531_v13, %v531_v13 }
  0xf6   :  { %662 = vst [vmem:[#allocation4 + $0x70] sm:$0xff] %v646_v50  ;;  %v635_v57 = vadd.f32 %v619_v52, %v603_v51  ;;  %v535_v60 = vmul.f32 %v800_v17, %v800_v17 }
  0xf7   :  { %v607_v58 = vadd.f32 %v591_v54, %v575_v53  ;;  %v623_v59 = vmul.f32 %v591_v54, %v591_v54  ;;  %v579_v61 = vadd.f32 %v563_v56, %v547_v55  ;;  %v595_v62 = vmul.f32 %v563_v56, %v563_v56 }
  0xf8   :  { %651 = vst [vmem:[#allocation4 + $0x18] sm:$0xff] %v635_v57  ;;  %v551_v63 = vadd.f32 %v800_v17, %v535_v60  ;;  %v567_v0 = vmul.f32 %v535_v60, %v535_v60 }
  0xf9   :  { %v639_v3 = vadd.f32 %v623_v59, %v607_v58  ;;  %v611_v4 = vadd.f32 %v595_v62, %v579_v61  ;;  %v627_v5 = vmul.f32 %v595_v62, %v595_v62 }
  0xfa   :  { %v583_v6 = vadd.f32 %v567_v0, %v551_v63  ;;  %v599_v7 = vmul.f32 %v567_v0, %v567_v0 }
  0xfb   :  { %655 = vst [vmem:[#allocation4 + $0x38] sm:$0xff] %v639_v3  ;;  %v643_v8 = vadd.f32 %v627_v5, %v611_v4 }
  0xfc   :  { %v615_v10 = vadd.f32 %v599_v7, %v583_v6  ;;  %v631_v2 = vmul.f32 %v599_v7, %v599_v7 }
  0xfd   :  { %659 = vst [vmem:[#allocation4 + $0x58] sm:$0xff] %v643_v8 }
  0xfe   :  { %v647_v11 = vadd.f32 %v631_v2, %v615_v10 }
 0x100   :  { %663 = vst [vmem:[#allocation4 + $0x78] sm:$0xff] %v647_v11 }
 0x101   :  { %676 = dma.vmem_to_hbm [thread:$0]  %s669_s16, 2048, %s671_s2, [#allocation5], %s829_s3, %s829_s3, %s830_s19  }
 0x102   :  { %825 = dma.done.wait [#allocation5], 2048  }
 0x103   :  { %826 = vsyncadd [#allocation5], 4294965248 }
 0x104   :  { %681 = vsyncpa [#allocation5], 1 }

</bundles_post_ra>
